<compile_context>
chip_gen: v6e
topology: v6e:2x2x1
jax: 0.10.0
libtpu: 0.0.40
codegen_flags: <defaults>
</compile_context>

<pallas_src>
import jax
import jax.numpy as jnp
from jax.experimental import pallas as pl
from jax.experimental.pallas import tpu as pltpu

LANES = 128
SUBLANES = 8
MAX_ROW_BLOCK = 1024  # 1024x128 f32 tile = 512 KiB; double-buffered ~1 MiB


def _round_up(x, m):
    return ((x + m - 1) // m) * m


def _make_sumsq_kernel(row_block, total_rows):
    """Kernel: sum of squares over a (total_rows, 128) slab, tiled by rows."""
    needs_mask = (total_rows % row_block) != 0  # static: compiled out if even

    def kernel(x_ref, o_ref, acc_ref):
        i = pl.program_id(0)

        @pl.when(i == 0)
        def _init():
            acc_ref[...] = jnp.zeros_like(acc_ref)

        xf = x_ref[...].astype(jnp.float32)
        if needs_mask:
            row_ids = (
                jax.lax.broadcasted_iota(jnp.int32, xf.shape, 0) + i * row_block
            )
            xf = jnp.where(row_ids < total_rows, xf, 0.0)

        # Pure elementwise accumulate (VALU), hidden under the input DMA.
        acc_ref[...] += xf * xf

        @pl.when(i == pl.num_programs(0) - 1)
        def _finish():
            # Single cross-lane/sublane reduce, done once at the end.
            o_ref[0, 0] = jnp.sum(acc_ref[...])

    return kernel


def gan_loss_train1(x):
    """MSE(x, 0) == mean(x**2), computed with a Pallas TPU reduction kernel."""
    n = x.size
    flat = jnp.ravel(x)  # keep original dtype (bf16 stays bf16 on the HBM read)
    rows = n // LANES

    if rows == 0:
        # Tiny input: not worth a kernel launch.
        xf = flat.astype(jnp.float32)
        return jnp.sum(xf * xf) / jnp.float32(n)

    n_main = rows * LANES
    row_block = min(MAX_ROW_BLOCK, _round_up(rows, SUBLANES))
    num_blocks = (rows + row_block - 1) // row_block

    if n_main == n:
        # Free reshape of the contiguous ravel -- no padding / copy.
        main2d = flat.reshape(rows, LANES)
        tail_sumsq = jnp.float32(0.0)
    else:
        # Sub-128 remainder: handle the tail in plain JAX (tiny), feed the
        # aligned prefix to the kernel.
        main2d = flat[:n_main].reshape(rows, LANES)
        tail = flat[n_main:].astype(jnp.float32)
        tail_sumsq = jnp.sum(tail * tail)

    kernel = _make_sumsq_kernel(row_block, rows)

    sumsq = pl.pallas_call(
        kernel,
        out_shape=jax.ShapeDtypeStruct((1, 1), jnp.float32),
        grid_spec=pltpu.PrefetchScalarGridSpec(
            num_scalar_prefetch=0,
            grid=(num_blocks,),
            in_specs=[pl.BlockSpec((row_block, LANES), lambda i: (i, 0))],
            out_specs=pl.BlockSpec(memory_space=pltpu.SMEM),
            scratch_shapes=[pltpu.VMEM((row_block, LANES), jnp.float32)],
        ),
        compiler_params=pltpu.CompilerParams(
            dimension_semantics=("arbitrary",),
        ),
        cost_estimate=pl.CostEstimate(
            flops=2 * n_main,
            transcendentals=0,
            bytes_accessed=n_main * x.dtype.itemsize + 4,
        ),
    )(main2d)

    total = sumsq[0, 0] + tail_sumsq
    # mean over the ORIGINAL element count (matches nn.MSELoss 'mean' reduction)
    return (total / jnp.float32(n)).astype(jnp.float32)


if __name__ == "__main__":
    key = jax.random.PRNGKey(0)

    # Primary case: typical small NCHW discriminator output map, f32.
    x = jax.random.normal(key, (2, 4, 16, 16), dtype=jnp.float32)
    loss = gan_loss_train1(x)
    jax.block_until_ready(loss)
    ref = jnp.mean(jnp.square(x.astype(jnp.float32)))
    assert jnp.allclose(loss, ref, rtol=1e-5, atol=1e-6), (loss, ref)

    # Secondary case: bf16 input with ragged shape (exercises in-kernel cast,
    # masked partial row-block, and the sub-128 tail path).
    key2 = jax.random.PRNGKey(1)
    y = jax.random.normal(key2, (3, 5, 17, 19), dtype=jnp.float32).astype(
        jnp.bfloat16
    )
    loss_y = gan_loss_train1(y)
    jax.block_until_ready(loss_y)
    ref_y = jnp.mean(jnp.square(y.astype(jnp.float32)))
    assert jnp.allclose(loss_y, ref_y, rtol=1e-5, atol=1e-6), (loss_y, ref_y)

    print("KERNEL_OK")
</pallas_src>

<mosaic_0001>
module attributes {stable_mosaic.version = 11 : i64} {
  func.func @kernel(%arg0: i32, %arg1: memref<16x128xf32, #tpu.memory_space<vmem>>, %arg2: memref<1x1xf32, #tpu.memory_space<smem>>, %arg3: memref<16x128xf32, #tpu.memory_space<vmem>>) attributes {dimension_semantics = [#tpu.dimension_semantics<arbitrary>], iteration_bounds = array<i64: 1>, scalar_prefetch = 0 : i64, scratch_operands = 1 : i64, tpu.core_type = #tpu.core_type<tc>, window_params = [{transform_indices = @transform_0, window_bounds = array<i64: 16, 128>}, {transform_indices = @transform_1, window_bounds = array<i64: 1, 1>}]} {
    %c0_i32 = arith.constant 0 : i32
    %0 = arith.cmpi eq, %arg0, %c0_i32 : i32
    %1 = arith.extui %0 : i1 to i32
    %c0_i32_0 = arith.constant 0 : i32
    %2 = arith.cmpi ne, %1, %c0_i32_0 : i32
    scf.if %2 {
      %cst = arith.constant 0.000000e+00 : f32
      %11 = vector.broadcast %cst : f32 to vector<16x128xf32>
      %c0_8 = arith.constant 0 : index
      %c0_9 = arith.constant 0 : index
      %12 = vector.load %arg3[%c0_8, %c0_9] : memref<16x128xf32, #tpu.memory_space<vmem>>, vector<16x128xf32>
      tpu.vector_store %arg3[%c0_8, %c0_9], %11 {strides = array<i32>} : memref<16x128xf32, #tpu.memory_space<vmem>>, vector<16x128xf32>,
    } else {
    }
    %c0 = arith.constant 0 : index
    %c0_1 = arith.constant 0 : index
    %3 = vector.load %arg1[%c0, %c0_1] : memref<16x128xf32, #tpu.memory_space<vmem>>, vector<16x128xf32>
    %c0_2 = arith.constant 0 : index
    %c0_3 = arith.constant 0 : index
    %4 = vector.load %arg3[%c0_2, %c0_3] : memref<16x128xf32, #tpu.memory_space<vmem>>, vector<16x128xf32>
    %5 = arith.mulf %3, %3 : vector<16x128xf32>
    %6 = arith.addf %4, %5 : vector<16x128xf32>
    %c0_4 = arith.constant 0 : index
    %c0_5 = arith.constant 0 : index
    %7 = vector.load %arg3[%c0_4, %c0_5] : memref<16x128xf32, #tpu.memory_space<vmem>>, vector<16x128xf32>
    tpu.vector_store %arg3[%c0_4, %c0_5], %6 {strides = array<i32>} : memref<16x128xf32, #tpu.memory_space<vmem>>, vector<16x128xf32>,
    %c0_i32_6 = arith.constant 0 : i32
    %8 = arith.cmpi eq, %arg0, %c0_i32_6 : i32
    %9 = arith.extui %8 : i1 to i32
    %c0_i32_7 = arith.constant 0 : i32
    %10 = arith.cmpi ne, %9, %c0_i32_7 : i32
    scf.if %10 {
      %c0_8 = arith.constant 0 : index
      %c0_9 = arith.constant 0 : index
      %11 = vector.load %arg3[%c0_8, %c0_9] : memref<16x128xf32, #tpu.memory_space<vmem>>, vector<16x128xf32>
      %12 = vector.shape_cast %11 : vector<16x128xf32> to vector<1x16x128xf32>
      %cst = arith.constant dense<0.000000e+00> : vector<1xf32>
      %13 = vector.multi_reduction <add>, %12, %cst [1, 2] : vector<1x16x128xf32> to vector<1xf32>
      %14 = vector.shape_cast %13 : vector<1xf32> to vector<1x1x1xf32>
      %15 = vector.extract %14[0, 0, 0] : f32 from vector<1x1x1xf32>
      %c0_10 = arith.constant 0 : index
      %c0_11 = arith.constant 0 : index
      %16 = memref.load %arg2[%c0_10, %c0_11] : memref<1x1xf32, #tpu.memory_space<smem>>
      memref.store %15, %arg2[%c0_10, %c0_11] : memref<1x1xf32, #tpu.memory_space<smem>>
    } else {
    }
    return
  }
  func.func @transform_0(%arg0: i32) -> (i32, i32) {
    %c0_i32 = arith.constant 0 : i32
    %c0_i32_0 = arith.constant 0 : i32
    return %arg0, %c0_i32 : i32, i32
  }
  func.func @transform_1(%arg0: i32) -> (i32, i32) {
    %c0_i32 = arith.constant 0 : i32
    %c0_i32_0 = arith.constant 0 : i32
    %c0_i32_1 = arith.constant 0 : i32
    return %c0_i32, %c0_i32_0 : i32, i32
  }
}

</mosaic_0001>

<bundles_post_ra>
// kernel: tpu_custom_call.1
= control target key start
LH: loop header
LB: loop body
LE: loop exit
PB: predicated region body
PF: predicated region fallthrough
CT: control target
= control target key end

     0   :  { %6 = vsyncpa [#allocation4], 0  ;;  %s128_s0 = inlined_call_operand.hbm [shape: f32[16,128], index: 0, kind: input, shape index: {}]   ;;  %s129_s1 = inlined_call_operand.hbm [shape: f32[1,1], index: 1, kind: output, shape index: {}]  }
   0x1   :  { %7 = vsyncpa [#allocation5], 0  ;;  %s108_s6 = smov [#allocation3]  }
   0x2   :  { %s13_s7 = sshll.u32 %s108_s6, 4  ;;  %s14_s7 = int_to_ptr.vmem [resolvable:$true] %s13_s7 }
   0x3   :  { %s84_s8 = scalar_lea.vmem %s14_s7, 256  ;;  %p89_p1 = scmp.lt.s32.totalorder %s14_s7, %s14_s7 }
   0x4   :  { %p85_p0 = scmp.ne.s32.totalorder %s14_s7, %s84_s8  ;;  %p90_p2 = scmp.lt.s32.totalorder %s84_s8, %s84_s8 }
   0x6   :  { %p91_p3 = por %p90_p2, %p89_p1 }
   0x8   :  { %p92_p4 = pnand %p91_p3, %p85_p0 }
   0xa   :  { %95 = shalt.err (!%p92_p4)
}
   0xb   :  { %s109_s9 = smov 128   ;;  %s110_s10 = smov 8  }
   0xc   :  { %19 = dma.hbm_to_vmem [thread:$0]  %s128_s0, 256, %s14_s7, [#allocation4], %s109_s9, %s109_s9, %s110_s10  }
   0xd   :  { %104 = dma.done.wait [#allocation4], 256  }
   0xe   :  { %105 = vsyncadd [#allocation4], 4294967040  ;;  %v29_v0 = vld [vmem:[#allocation3] sm:$0xff]  ;;  %v30_v1 = vld [vmem:[#allocation3 + $0x8] sm:$0xff]  ;;  %s111_s14 = smov [#allocation6]  }
   0xf   :  { %v33_v2 = vmul.f32 %v29_v0, %v29_v0  ;;  %v34_v3 = vmul.f32 %v30_v1, %v30_v1 }
  0x11   :  { %v44_v4 = vadd.f32 %v34_v3, %v33_v2 }
  0x13   :  { %45 = vadd.xlane.f32.xlu0 %v44_v4 }
  0x9c   :  { %v46_v5 = vpop.xlane.xlu0 %45 }
  0x9d   :  { %v47_v6 = vrot.slane %v46_v5, 4 }
  0x9f   :  { %v48_v7 = vadd.f32 %v47_v6, %v46_v5 }
  0xa1   :  { %v49_v8 = vrot.slane %v48_v7, 2 }
  0xa3   :  { %v50_v9 = vadd.f32 %v49_v8, %v48_v7 }
  0xa5   :  { %v51_v10 = vrot.slane %v50_v9, 1 }
  0xa7   :  { %v52_v11 = vadd.f32 %v51_v10, %v50_v9 }
  0xa9   :  { %70 = vpush %v52_v11 }
  0xda   :  { %s71_s13 = spop %70 }
  0xdb   :  { %55 = sst [smem:[#allocation6]] %s71_s13 }
  0xdc   :  { %63 = dma.smem_to_hbm %s111_s14, 16, %s129_s1, [#allocation5]  }
  0xdd   :  { %106 = dma.done.wait [#allocation5], 16  }
  0xde   :  { %107 = vsyncadd [#allocation5], 4294967280 }
  0xdf   :  { %67 = sfence }
  0xe0   :  { %68 = vsyncpa [#allocation4], 1 }
  0xe1   :  { %69 = vsyncpa [#allocation5], 1 }

</bundles_post_ra>
